<compile_context>
chip_gen: v6e
topology: v6e:2x2x1
jax: 0.10.0
libtpu: 0.0.40
codegen_flags: <defaults>
</compile_context>

<pallas_src>
import functools

import jax
import jax.numpy as jnp
from jax.experimental import pallas as pl
from jax.experimental.pallas import tpu as pltpu


def _round_up(x, m):
    return (x + m - 1) // m * m


def _reward_criterion_kernel(logp_ref, seq_ref, reward_ref, out_ref, *,
                             seq_len, total_elems, block_rows, row_width):
    pid = pl.program_id(0)

    logp = logp_ref[...].astype(jnp.float32)        # (tb, W)
    reward = reward_ref[...].astype(jnp.float32)    # (tb, W)
    seq = seq_ref[...]                              # (tb, W) integer

    shape = logp.shape
    lane = jax.lax.broadcasted_iota(jnp.int32, shape, 1)
    row = jax.lax.broadcasted_iota(jnp.int32, shape, 0) + pid * block_rows

    # Shift the aliveness mask right by one token via an XLU lane-rotate.  seq_len
    # divides row_width, so the rotate's wrap only ever lands on lane % seq_len == 0,
    # which is overridden to 1 (the PyTorch "first column = 1" rule).
    alive = (seq > 0).astype(jnp.float32)
    prev_alive = pltpu.roll(alive, shift=1, axis=1) > 0.5
    tok = lane % seq_len
    keep = (tok == 0) | prev_alive

    # Flat-index validity: discards the unspecified tail of a partial last block
    # (no wrapper-side padding of the inputs).
    flat = row * row_width + lane
    keep = keep & (flat < total_elems)

    # Select (not multiply) so garbage NaN/Inf in out-of-bounds lanes cannot poison sums.
    num_part = jnp.sum(jnp.where(keep, -logp * reward, jnp.float32(0.0)))
    den_part = jnp.sum(keep.astype(jnp.float32))

    # Lane-dense (8, 128) partial-result block: [0,0]=num, [0,1]=den, rest 0.
    sub = jax.lax.broadcasted_iota(jnp.int32, out_ref.shape, 0)
    ol = jax.lax.broadcasted_iota(jnp.int32, out_ref.shape, 1)
    out_ref[...] = jnp.where(
        (sub == 0) & (ol == 0), num_part,
        jnp.where((sub == 0) & (ol == 1), den_part, jnp.float32(0.0)))


_WORKING_SET_BUDGET = 24 * 1024 * 1024   # double-buffered input working set (v7x-safe)
_VMEM_LIMIT_BYTES = 48 * 1024 * 1024     # <= ~48 MiB for v7x's 64 MiB VMEM; fine on v5e/v6e


def reward_criterion(logp, seq, reward, *, block_rows=None):
    """Self-critical reward loss.

    logp:   (B, T) float (f32 or bf16 -- upcast in-kernel)
    seq:    (B, T) integer token ids (int32; int8 also supported)
    reward: (B, T) float (f32 or bf16)
    returns scalar f32 = sum(-logp*reward*mask) / sum(mask), mask = right-shifted (seq>0).
    """
    B, T = logp.shape
    N = B * T

    # Lane-dense fold (free row-major reshape) when the token axis is narrower than a
    # vreg row and folds evenly into 128 lanes.
    W, R = T, B
    if T < 128 and 128 % T == 0 and N % 128 == 0:
        W, R = 128, N // 128
        logp = logp.reshape(R, W)
        seq = seq.reshape(R, W)
        reward = reward.reshape(R, W)

    # Row-tile sizing: lane-padded width x real itemsizes x2 (double buffering).
    itemsizes = (jnp.dtype(logp.dtype).itemsize + jnp.dtype(seq.dtype).itemsize
                 + jnp.dtype(reward.dtype).itemsize)
    bytes_per_row = 2 * _round_up(W, 128) * itemsizes
    tb_cap = max(32, (_WORKING_SET_BUDGET // bytes_per_row) // 32 * 32)

    if block_rows is not None:
        tb = int(block_rows)
    else:
        # Prefer >= 2 grid steps so the "parallel" axis can span both v7x TensorCores.
        tb = min(tb_cap, max(32, _round_up(pl.cdiv(R, 2), 32)))
    if tb >= R:
        tb = R            # single block; block dims == array dims is always legal
    grid_r = pl.cdiv(R, tb)

    kernel = functools.partial(
        _reward_criterion_kernel,
        seq_len=T, total_elems=N, block_rows=tb, row_width=W)

    partials = pl.pallas_call(
        kernel,
        out_shape=jax.ShapeDtypeStruct((grid_r * 8, 128), jnp.float32),
        grid_spec=pltpu.PrefetchScalarGridSpec(
            num_scalar_prefetch=0,
            grid=(grid_r,),
            in_specs=[
                pl.BlockSpec((tb, W), lambda i: (i, 0)),   # logp
                pl.BlockSpec((tb, W), lambda i: (i, 0)),   # seq
                pl.BlockSpec((tb, W), lambda i: (i, 0)),   # reward
            ],
            out_specs=pl.BlockSpec((8, 128), lambda i: (i, 0)),
        ),
        compiler_params=pltpu.CompilerParams(
            dimension_semantics=("parallel",),
            vmem_limit_bytes=_VMEM_LIMIT_BYTES,
        ),
    )(logp, seq, reward)

    p = partials.reshape(grid_r, 8, 128)
    num = jnp.sum(p[:, 0, 0])
    den = jnp.sum(p[:, 0, 1])
    return num / den


def _reference(logp, seq, reward):
    logp = logp.astype(jnp.float32)
    reward = reward.astype(jnp.float32)
    m = (seq > 0).astype(jnp.float32)
    mask = jnp.concatenate(
        [jnp.ones((seq.shape[0], 1), jnp.float32), m[:, :-1]], axis=1)
    return jnp.sum(-logp * reward * mask) / jnp.sum(mask)


if __name__ == "__main__":
    # 1) Tiny single-block case (B=2, T=8), f32.
    k1, k2, k3 = jax.random.split(jax.random.PRNGKey(0), 3)
    B, T = 2, 8
    logp = -jax.random.uniform(k1, (B, T), jnp.float32, 0.1, 5.0)
    seq = jax.random.randint(k2, (B, T), 0, 10, jnp.int32)
    reward = jax.random.normal(k3, (B, T), jnp.float32)
    out = jax.block_until_ready(reward_criterion(logp, seq, reward))
    ref = _reference(logp, seq, reward)
    assert jnp.allclose(out, ref, rtol=1e-5, atol=1e-5), (out, ref)

    # 2) Multi-block grid with a partial (out-of-bounds) last block, no input padding:
    #    B=20, T=16, block_rows=8 -> grid=3, last block covers rows [16, 24).
    k4, k5, k6 = jax.random.split(jax.random.PRNGKey(1), 3)
    B2, T2 = 20, 16
    logp2 = -jax.random.uniform(k4, (B2, T2), jnp.float32, 0.1, 5.0)
    seq2 = jax.random.randint(k5, (B2, T2), 0, 10, jnp.int32)
    reward2 = jax.random.normal(k6, (B2, T2), jnp.float32)
    out2 = jax.block_until_ready(reward_criterion(logp2, seq2, reward2, block_rows=8))
    ref2 = _reference(logp2, seq2, reward2)
    assert jnp.allclose(out2, ref2, rtol=1e-5, atol=1e-5), (out2, ref2)

    # 3) Lane-dense folded path (B*T % 128 == 0) with bf16 logp/reward: B=64, T=16.
    k7, k8, k9 = jax.random.split(jax.random.PRNGKey(2), 3)
    B3, T3 = 64, 16
    logp3 = -jax.random.uniform(k7, (B3, T3), jnp.float32, 0.1, 5.0).astype(jnp.bfloat16)
    seq3 = jax.random.randint(k8, (B3, T3), 0, 10, jnp.int32)
    reward3 = jax.random.normal(k9, (B3, T3), jnp.float32).astype(jnp.bfloat16)
    out3 = jax.block_until_ready(reward_criterion(logp3, seq3, reward3))
    ref3 = _reference(logp3, seq3, reward3)
    assert jnp.allclose(out3, ref3, rtol=1e-4, atol=1e-4), (out3, ref3)

    print("KERNEL_OK")
</pallas_src>

<mosaic_0001>
module attributes {stable_mosaic.version = 11 : i64} {
  func.func @_reward_criterion_kernel(%arg0: i32, %arg1: memref<2x8xf32, #tpu.memory_space<vmem>>, %arg2: memref<2x8xi32, #tpu.memory_space<vmem>>, %arg3: memref<2x8xf32, #tpu.memory_space<vmem>>, %arg4: memref<8x128xf32, #tpu.memory_space<vmem>>) attributes {dimension_semantics = [#tpu.dimension_semantics<parallel>], iteration_bounds = array<i64: 1>, scalar_prefetch = 0 : i64, scratch_operands = 0 : i64, tpu.core_type = #tpu.core_type<tc>, window_params = [{transform_indices = @transform_0, window_bounds = array<i64: 2, 8>}, {transform_indices = @transform_1, window_bounds = array<i64: 2, 8>}, {transform_indices = @transform_2, window_bounds = array<i64: 2, 8>}, {transform_indices = @transform_3, window_bounds = array<i64: 8, 128>}]} {
    %c0 = arith.constant 0 : index
    %c0_0 = arith.constant 0 : index
    %0 = vector.load %arg1[%c0, %c0_0] : memref<2x8xf32, #tpu.memory_space<vmem>>, vector<2x8xf32>
    %c0_1 = arith.constant 0 : index
    %c0_2 = arith.constant 0 : index
    %1 = vector.load %arg3[%c0_1, %c0_2] : memref<2x8xf32, #tpu.memory_space<vmem>>, vector<2x8xf32>
    %c0_3 = arith.constant 0 : index
    %c0_4 = arith.constant 0 : index
    %2 = vector.load %arg2[%c0_3, %c0_4] : memref<2x8xi32, #tpu.memory_space<vmem>>, vector<2x8xi32>
    %3 = tpu.iota {dimensions = array<i32: 1>} : vector<2x8xi32>
    %4 = tpu.iota {dimensions = array<i32: 0>} : vector<2x8xi32>
    %c2_i32 = arith.constant 2 : i32
    %5 = arith.muli %arg0, %c2_i32 : i32
    %6 = vector.broadcast %5 : i32 to vector<2x8xi32>
    %7 = arith.addi %4, %6 : vector<2x8xi32>
    %c0_i32 = arith.constant 0 : i32
    %8 = vector.broadcast %c0_i32 : i32 to vector<2x8xi32>
    %9 = arith.cmpi sgt, %2, %8 : vector<2x8xi32>
    %10 = arith.extui %9 : vector<2x8xi1> to vector<2x8xi32>
    %11 = arith.sitofp %10 : vector<2x8xi32> to vector<2x8xf32>
    %c1_i32 = arith.constant 1 : i32
    %12 = tpu.dynamic_rotate %11 by %c1_i32 dim 1 : vector<2x8xf32>, i32 -> vector<2x8xf32>
    %cst = arith.constant 5.000000e-01 : f32
    %13 = vector.broadcast %cst : f32 to vector<2x8xf32>
    %14 = arith.cmpf ogt, %12, %13 : vector<2x8xf32>
    %c8_i32 = arith.constant 8 : i32
    %c0_i32_5 = arith.constant 0 : i32
    %15 = arith.cmpi eq, %c8_i32, %c0_i32_5 : i32
    %c1_i32_6 = arith.constant 1 : i32
    %16 = arith.select %15, %c1_i32_6, %c8_i32 : i32
    %17 = vector.broadcast %16 : i32 to vector<2x8xi32>
    %18 = arith.remsi %3, %17 : vector<2x8xi32>
    %c0_i32_7 = arith.constant 0 : i32
    %19 = vector.broadcast %c0_i32_7 : i32 to vector<2x8xi32>
    %20 = arith.cmpi ne, %18, %19 : vector<2x8xi32>
    %c0_i32_8 = arith.constant 0 : i32
    %21 = vector.broadcast %c0_i32_8 : i32 to vector<2x8xi32>
    %22 = arith.cmpi slt, %18, %21 : vector<2x8xi32>
    %c0_i32_9 = arith.constant 0 : i32
    %23 = arith.cmpi slt, %16, %c0_i32_9 : i32
    %24 = vector.broadcast %23 : i1 to vector<2x8xi1>
    %25 = vector.broadcast %24 : vector<2x8xi1> to vector<2x8xi1>
    %26 = arith.xori %22, %25 : vector<2x8xi1>
    %27 = arith.andi %26, %20 : vector<2x8xi1>
    %28 = vector.broadcast %16 : i32 to vector<2x8xi32>
    %29 = arith.addi %18, %28 : vector<2x8xi32>
    %30 = arith.select %27, %29, %18 : vector<2x8xi1>, vector<2x8xi32>
    %c0_i32_10 = arith.constant 0 : i32
    %31 = vector.broadcast %c0_i32_10 : i32 to vector<2x8xi32>
    %32 = arith.cmpi eq, %30, %31 : vector<2x8xi32>
    %33 = arith.ori %32, %14 : vector<2x8xi1>
    %c8_i32_11 = arith.constant 8 : i32
    %34 = vector.broadcast %c8_i32_11 : i32 to vector<2x8xi32>
    %35 = arith.muli %7, %34 : vector<2x8xi32>
    %36 = arith.addi %35, %3 : vector<2x8xi32>
    %c16_i32 = arith.constant 16 : i32
    %37 = vector.broadcast %c16_i32 : i32 to vector<2x8xi32>
    %38 = arith.cmpi slt, %36, %37 : vector<2x8xi32>
    %39 = arith.andi %33, %38 : vector<2x8xi1>
    %cst_12 = arith.constant 0.000000e+00 : f32
    %40 = vector.broadcast %cst_12 : f32 to vector<2x8xf32>
    %41 = arith.subf %40, %0 : vector<2x8xf32>
    %42 = arith.mulf %41, %1 : vector<2x8xf32>
    %cst_13 = arith.constant 0.000000e+00 : f32
    %43 = vector.broadcast %cst_13 : f32 to vector<2x8xf32>
    %44 = arith.select %39, %42, %43 : vector<2x8xi1>, vector<2x8xf32>
    %45 = vector.shape_cast %44 : vector<2x8xf32> to vector<1x2x8xf32>
    %cst_14 = arith.constant dense<0.000000e+00> : vector<1xf32>
    %46 = vector.multi_reduction <add>, %45, %cst_14 [1, 2] : vector<1x2x8xf32> to vector<1xf32>
    %47 = vector.shape_cast %46 : vector<1xf32> to vector<1x1x1xf32>
    %48 = vector.extract %47[0, 0, 0] : f32 from vector<1x1x1xf32>
    %49 = arith.extui %39 : vector<2x8xi1> to vector<2x8xi32>
    %50 = arith.sitofp %49 : vector<2x8xi32> to vector<2x8xf32>
    %51 = vector.shape_cast %50 : vector<2x8xf32> to vector<1x2x8xf32>
    %cst_15 = arith.constant dense<0.000000e+00> : vector<1xf32>
    %52 = vector.multi_reduction <add>, %51, %cst_15 [1, 2] : vector<1x2x8xf32> to vector<1xf32>
    %53 = vector.shape_cast %52 : vector<1xf32> to vector<1x1x1xf32>
    %54 = vector.extract %53[0, 0, 0] : f32 from vector<1x1x1xf32>
    %55 = tpu.iota {dimensions = array<i32: 0>} : vector<8x128xi32>
    %56 = tpu.iota {dimensions = array<i32: 1>} : vector<8x128xi32>
    %c0_i32_16 = arith.constant 0 : i32
    %57 = vector.broadcast %c0_i32_16 : i32 to vector<8x128xi32>
    %58 = arith.cmpi eq, %55, %57 : vector<8x128xi32>
    %c0_i32_17 = arith.constant 0 : i32
    %59 = vector.broadcast %c0_i32_17 : i32 to vector<8x128xi32>
    %60 = arith.cmpi eq, %56, %59 : vector<8x128xi32>
    %61 = arith.andi %58, %60 : vector<8x128xi1>
    %c0_i32_18 = arith.constant 0 : i32
    %62 = vector.broadcast %c0_i32_18 : i32 to vector<8x128xi32>
    %63 = arith.cmpi eq, %55, %62 : vector<8x128xi32>
    %c1_i32_19 = arith.constant 1 : i32
    %64 = vector.broadcast %c1_i32_19 : i32 to vector<8x128xi32>
    %65 = arith.cmpi eq, %56, %64 : vector<8x128xi32>
    %66 = arith.andi %63, %65 : vector<8x128xi1>
    %cst_20 = arith.constant 0.000000e+00 : f32
    %67 = vector.broadcast %54 : f32 to vector<8x128xf32>
    %68 = vector.broadcast %cst_20 : f32 to vector<8x128xf32>
    %69 = arith.select %66, %67, %68 : vector<8x128xi1>, vector<8x128xf32>
    %70 = vector.broadcast %48 : f32 to vector<8x128xf32>
    %71 = arith.select %61, %70, %69 : vector<8x128xi1>, vector<8x128xf32>
    %c0_21 = arith.constant 0 : index
    %c0_22 = arith.constant 0 : index
    %72 = vector.load %arg4[%c0_21, %c0_22] : memref<8x128xf32, #tpu.memory_space<vmem>>, vector<8x128xf32>
    tpu.vector_store %arg4[%c0_21, %c0_22], %71 {strides = array<i32>} : memref<8x128xf32, #tpu.memory_space<vmem>>, vector<8x128xf32>,
    return
  }
  func.func @transform_0(%arg0: i32) -> (i32, i32) {
    %c0_i32 = arith.constant 0 : i32
    %c0_i32_0 = arith.constant 0 : i32
    return %arg0, %c0_i32 : i32, i32
  }
  func.func @transform_1(%arg0: i32) -> (i32, i32) {
    %c0_i32 = arith.constant 0 : i32
    %c0_i32_0 = arith.constant 0 : i32
    return %arg0, %c0_i32 : i32, i32
  }
  func.func @transform_2(%arg0: i32) -> (i32, i32) {
    %c0_i32 = arith.constant 0 : i32
    %c0_i32_0 = arith.constant 0 : i32
    return %arg0, %c0_i32 : i32, i32
  }
  func.func @transform_3(%arg0: i32) -> (i32, i32) {
    %c0_i32 = arith.constant 0 : i32
    %c0_i32_0 = arith.constant 0 : i32
    return %arg0, %c0_i32 : i32, i32
  }
}

</mosaic_0001>

<bundles_post_ra>
// kernel: tpu_custom_call.1
= control target key start
LH: loop header
LB: loop body
LE: loop exit
PB: predicated region body
PF: predicated region fallthrough
CT: control target
= control target key end

     0   :  { %8 = vsyncpa [#allocation3], 0  ;;  %s252_s0 = inlined_call_operand.hbm [shape: f32[2,8], index: 0, kind: input, shape index: {}]   ;;  %s253_s1 = inlined_call_operand.hbm [shape: s32[2,8], index: 1, kind: input, shape index: {}]   ;;  %s254_s2 = inlined_call_operand.vmem [shape: f32[2,8], index: 2, kind: input, shape index: {}]   ;;  %s255_s3 = inlined_call_operand.hbm [shape: f32[8,128], index: 3, kind: output, shape index: {}]  }
   0x1   :  { %9 = vsyncpa [#allocation6], 0 }
   0x2   :  { %10 = vsyncpa [#allocation4], 0  ;;  %s213_s12 = smov [#allocation2]   ;;  %s214_s14 = smov [#allocation5]  }
   0x3   :  { %s17_s13 = sshll.u32 %s213_s12, 4  ;;  %s27_s15 = sshll.u32 %s214_s14, 4  ;;  %s18_s13 = int_to_ptr.vmem [resolvable:$true] %s17_s13  ;;  %s28_s15 = int_to_ptr.vmem [resolvable:$true] %s27_s15 }
   0x4   :  { %s155_s16 = scalar_lea.vmem %s18_s13, 32  ;;  %p160_p1 = scmp.lt.s32.totalorder %s18_s13, %s18_s13 }
   0x5   :  { %p156_p0 = scmp.ne.s32.totalorder %s18_s13, %s155_s16  ;;  %p161_p2 = scmp.lt.s32.totalorder %s155_s16, %s155_s16 }
   0x7   :  { %p162_p3 = por %p161_p2, %p160_p1 }
   0x9   :  { %p163_p4 = pnand %p162_p3, %p156_p0 }
   0xb   :  { %166 = shalt.err (!%p163_p4)
}
   0xc   :  { %20 = dma.hbm_to_vmem [thread:$0]  %s252_s0, 32, %s18_s13, [#allocation3]  }
   0xd   :  { %s175_s19 = scalar_lea.vmem %s28_s15, 32  ;;  %p180_p6 = scmp.lt.s32.totalorder %s28_s15, %s28_s15 }
   0xe   :  { %p176_p5 = scmp.ne.s32.totalorder %s28_s15, %s175_s19  ;;  %p181_p7 = scmp.lt.s32.totalorder %s175_s19, %s175_s19 }
  0x10   :  { %p182_p8 = por %p181_p7, %p180_p6 }
  0x12   :  { %p183_p9 = pnand %p182_p8, %p176_p5 }
  0x14   :  { %186 = shalt.err (!%p183_p9)
}
  0x15   :  { %30 = dma.hbm_to_vmem [thread:$0]  %s253_s1, 32, %s28_s15, [#allocation6]  }
  0x16   :  { %207 = dma.done.wait [#allocation3], 32  }
  0x17   :  { %208 = vsyncadd [#allocation3], 4294967264 }
  0x18   :  { %209 = dma.done.wait [#allocation6], 32  }
  0x19   :  { %210 = vsyncadd [#allocation6], 4294967264  ;;  %v41_v0 = vld [vmem:[#allocation5] sm:$0x3]  ;;  %v215_v1 = vmov 0.0   ;;  %s216_s0 = smov 8   ;;  %v42_v9 = vlaneseq }
  0x1a   :  { %vm49_vm0 = vcmp.gt.s32.totalorder %v41_v0, 0  ;;  %vm52_vm1 = vcmask 1047616   ;;  %v217_v7 = vmov 0   ;;  %s218_s1 = smov 121   ;;  %v39_v13 = vld [vmem:[#allocation2] sm:$0x3] }
  0x1b   :  { %v134_v2 = vsel %vm49_vm0, 1.0, %v215_v1  ;;  %v45_v10 = vshrl.u32 %v42_v9, 7  ;;  %v43_v11 = vand.u32 127, %v42_v9  ;;  %v82_v16 = vsub.f32 0.0, %v39_v13  ;;  %v40_v17 = vld [vmem:[%s254_s2] sm:$0x3] }
  0x1c   :  { %53 = vrot.lane.b32.xlu0 %v134_v2, %s216_s0  ;;  %vm85_vm7 = vcmask 58368   ;;  %s219_s24 = smov [#allocation7]  }
  0x1d   :  { %v78_v12 = vmul.u32 8, %v45_v10  ;;  %v64_v14 = vand.u32 7, %v43_v11  ;;  %v83_v19 = vmul.f32 %v82_v16, %v40_v17  ;;  %vm108_vm9 = vcmp.eq.s32.totalorder %v45_v10, 0  ;;  %s124_s25 = sshll.u32 %s219_s24, 4  ;;  %s125_s25 = int_to_ptr.vmem [resolvable:$true] %s124_s25 }
  0x1e   :  { %vm111_vm10 = vcmp.eq.s32.totalorder %v43_v11, 1  ;;  %vm109_vm11 = vcmp.eq.s32.totalorder %v43_v11, 0  ;;  %s187_s27 = scalar_lea.vmem %s125_s25, 128  ;;  %p192_p11 = scmp.lt.s32.totalorder %s125_s25, %s125_s25 }
  0x1f   :  { %v79_v15 = vadd.s32 %v78_v12, %v43_v11  ;;  %vm72_vm3 = vcmp.eq.s32.totalorder %v64_v14, 0  ;;  %vm112_vm12 = vmand %vm108_vm9, %vm111_vm10  ;;  %p188_p10 = scmp.ne.s32.totalorder %s125_s25, %s187_s27  ;;  %p193_p12 = scmp.lt.s32.totalorder %s187_s27, %s187_s27 }
  0x20   :  { %vm110_vm13 = vmand %vm108_vm9, %vm109_vm11 }
  0x21   :  { %vm80_vm4 = vcmp.lt.s32.totalorder %v79_v15, 16  ;;  %p194_p13 = por %p193_p12, %p192_p11 }
  0x23   :  { %p195_p0 = pnand %p194_p13, %p188_p10 }
  0x8e   :  { %v54_v3 = vpop.permute.xlu0 %53 }
  0x8f   :  { %v55_v4 = vsel %vm52_vm1, %v54_v3, %v134_v2 }
  0x90   :  { %56 = vrot.lane.b32.xlu0 %v55_v4, %s216_s0 }
 0x102   :  { %v57_v5 = vpop.permute.xlu0 %56 }
 0x103   :  { %v58_v6 = vsel %vm52_vm1, %v57_v5, %v134_v2 }
 0x104   :  { %vm59_vm2 = vcmp.gt.f32.partialorder %v58_v6, 0.5 }
 0x105   :  { %v73_v8 = vsel %vm59_vm2, 1, %v217_v7 }
 0x106   :  { %74 = vrot.lane.b32.xlu1 %v73_v8, %s218_s1 }
 0x178   :  { %v75_v18 = vpop.permute.xlu1 %74 }
 0x179   :  { %vm76_vm5 = vcmp.ne.s32.totalorder %v75_v18, 0 }
 0x17a   :  { %vm77_vm6 = vmor %vm72_vm3, %vm76_vm5 }
 0x17b   :  { %vm81_vm8 = vmand %vm77_vm6, %vm80_vm4 }
 0x17c   :  { %v135_v20 = vsel %vm81_vm8, 1.0, %v215_v1  ;;  %v84_v21 = vsel %vm81_vm8, %v83_v19, 0.0 }
 0x17d   :  { %v98_v22 = vsel %vm85_vm7, %v135_v20, 0.0  ;;  %v86_v23 = vsel %vm85_vm7, %v84_v21, 0.0 }
 0x17e   :  { %99 = vadd.xlane.f32.xlu0 %v98_v22  ;;  %87 = vadd.xlane.f32.xlu1 %v86_v23 }
 0x207   :  { %v100_v24 = vpop.xlane.xlu0 %99  ;;  %v88_v25 = vpop.xlane.xlu1 %87 }
 0x208   :  { %v101_v26 = vrot.slane %v100_v24, 4  ;;  %v89_v27 = vrot.slane %v88_v25, 4 }
 0x20a   :  { %v102_v28 = vadd.f32 %v101_v26, %v100_v24  ;;  %v90_v29 = vadd.f32 %v89_v27, %v88_v25 }
 0x20c   :  { %v103_v30 = vrot.slane %v102_v28, 2  ;;  %v91_v31 = vrot.slane %v90_v29, 2 }
 0x20e   :  { %v104_v32 = vadd.f32 %v103_v30, %v102_v28  ;;  %v92_v33 = vadd.f32 %v91_v31, %v90_v29 }
 0x210   :  { %v93_v34 = vrot.slane %v92_v33, 1  ;;  %v105_v35 = vrot.slane %v104_v32, 1 }
 0x212   :  { %v94_v36 = vadd.f32 %v93_v34, %v92_v33  ;;  %v106_v37 = vadd.f32 %v105_v35, %v104_v32 }
 0x214   :  { %136 = vpush %v94_v36 }
 0x215   :  { %138 = vpush %v106_v37 }
 0x245   :  { %s137_s2 = spop %136 }
 0x246   :  { %v115_v38 = vstv %s137_s2  ;;  %s139_s26 = spop %138 }
 0x247   :  { %v113_v39 = vstv %s139_s26 }
 0x248   :  { %v114_v40 = vsel %vm112_vm12, %v113_v39, 0.0 }
 0x249   :  { %v116_v41 = vsel %vm110_vm13, %v115_v38, %v114_v40 }
 0x24a   :  { %117 = vst [vmem:[#allocation7] sm:$0xff] %v116_v41 }
 0x24b   :  { %198 = shalt.err (!%p195_p0)
}
 0x24c   :  { %127 = dma.vmem_to_hbm [thread:$0]  %s125_s25, 128, %s255_s3, [#allocation4]  }
 0x24d   :  { %211 = dma.done.wait [#allocation4], 128  }
 0x24e   :  { %212 = vsyncadd [#allocation4], 4294967168 }
 0x24f   :  { %131 = vsyncpa [#allocation3], 1 }
 0x250   :  { %132 = vsyncpa [#allocation6], 1 }
 0x251   :  { %133 = vsyncpa [#allocation4], 1 }

</bundles_post_ra>
